<compile_context>
chip_gen: v7x
topology: tpu7x:2x2x1
jax: 0.10.0
libtpu: 0.0.40
codegen_flags: <defaults>
</compile_context>

<pallas_src>
import jax
import jax.numpy as jnp
from jax import lax
from jax.experimental import pallas as pl
from jax.experimental.pallas import tpu as pltpu

OBS_LEN = 8                      # args.obs_length
PRED_LEN = 12                    # prediction horizon
HIDDEN = 32                      # args.hidden_size
K_MODES = 4                      # number of predicted modes
KP = K_MODES * PRED_LEN          # 48
TH = OBS_LEN * HIDDEN            # 256
LANES = 128
XF_LANES = 2 * OBS_LEN           # xflat occupies lanes 0:16 of the xin slab
AV_LANE0 = XF_LANES              # absvol occupies lanes 16:20 of the xin slab
GMASK_LANE0 = 96                 # gmask broadcast over lanes 96:128 of side slab
LOSS_LANE = 4 * PRED_LEN         # traj lane 48 carries the per-row mean best dist
ROW_TILE = 256                   # rows per grid step once N is large
WSTACK_ROWS = 2 * TH + LANES + HIDDEN   # 672


def _round_up(x, m):
    return ((x + m - 1) // m) * m


# ---------------------------------------------------------------------------
# Fused kernel: encoder -> graph transformer -> (folded goal) -> mode decoder
# -> best-of-K mdn loss.  Grid iterates row tiles of the agent axis.
# ---------------------------------------------------------------------------
def _make_kernel(np_rows, tn):
    T, H, P, K = OBS_LEN, HIDDEN, PRED_LEN, K_MODES

    def kernel(xin_ref, side_ref, s_ref, wenc1_ref, wstack_ref, brow_ref, sel_ref,
               dec_ref, traj_ref):
        # ---- full-scope encoder (the S aggregation couples all rows) --------
        xin = xin_ref[...]                                        # (Np,128) bf16
        xe = jnp.maximum(
            jnp.dot(xin, wenc1_ref[...], preferred_element_type=jnp.float32)
            + brow_ref[:, 0:TH], 0.0)                             # (Np,256) f32
        xe_b = xe.astype(jnp.bfloat16)

        # fullpack cols: 0:32 fproj (= hidden@Wg_Ah + absvol@Wg_Aa),
        #                32:64 hidden, 64:96 gt_direct (pre-S, pre-mask), 96:128 pad
        fullpack = (jnp.dot(xe_b, wstack_ref[0:TH, :],
                            preferred_element_type=jnp.float32)
                    + jnp.dot(xin, wstack_ref[TH:TH + LANES, :],
                              preferred_element_type=jnp.float32)
                    + brow_ref[:, TH:TH + LANES])                 # (Np,128) f32
        fproj_b = fullpack[:, 0:H].astype(jnp.bfloat16)           # (Np,32)

        # ---- tile scope ------------------------------------------------------
        if np_rows == tn:                                         # single-tile fast path
            xe_t, pack_t = xe_b, fullpack
        else:
            r0 = pl.multiple_of(pl.program_id(0) * tn, tn)
            xe_t = lax.dynamic_slice_in_dim(xe_b, r0, tn, 0)
            pack_t = lax.dynamic_slice_in_dim(fullpack, r0, tn, 0)

        hidden_t = pack_t[:, H:2 * H]
        gtd_t = pack_t[:, 2 * H:3 * H]

        # segment-sum of [hidden|absvol] pre-projected by the GT weight:
        # (S @ f) @ Wgf == S @ (f @ Wgf)  -> one (TN,Np)x(Np,32) bf16 matmul.
        agg_t = jnp.dot(s_ref[...], fproj_b,
                        preferred_element_type=jnp.float32)       # (TN,32)

        side = side_ref[...]                                      # (TN,128) f32
        gmask = side[:, GMASK_LANE0:GMASK_LANE0 + H]
        hidden_g = hidden_t + gmask * (gtd_t + agg_t)             # residual, masked

        # mode decoder with the (linear) goal decoder folded in:
        # dec = xe@Wd_xe + hidden_g@Wd_hg + bd   (96 real cols, padded to 128)
        dec = (jnp.dot(xe_t, wstack_ref[TH + LANES:2 * TH + LANES, :],
                       preferred_element_type=jnp.float32)
               + jnp.dot(hidden_g.astype(jnp.bfloat16),
                         wstack_ref[2 * TH + LANES:2 * TH + LANES + H, :],
                         preferred_element_type=jnp.float32)
               + brow_ref[:, TH + LANES:TH + 2 * LANES])          # (TN,128)
        dec_ref[...] = dec                                        # lane-dense store

        # ---- mdn_loss_nonly: best-of-K by summed / final displacement -------
        d = dec - side                                            # lanes 0:96 = pred - gt
        dx = d[:, 0:KP]
        dy = d[:, KP:2 * KP]
        dist = jnp.sqrt(dx * dx + dy * dy)                        # (TN,48) per-step L2, f32

        # per-mode ADE sums / FDE picks via one constant-matrix dot
        red = jnp.dot(dist, sel_ref[0][0:KP, :],
                      preferred_element_type=jnp.float32)         # (TN,128): 0:4 ADE, 4:8 FDE

        lane = lax.broadcasted_iota(jnp.int32, (tn, LANES), 1)
        big = jnp.float32(3.0e38)

        ade_vals = jnp.where(lane < K, red, big)
        ade_min = jnp.min(ade_vals, axis=-1, keepdims=True)
        ade_idx = jnp.min(jnp.where(ade_vals <= ade_min, lane, 127),
                          axis=-1, keepdims=True)                 # first-index tie-break
        fde_vals = jnp.where((lane >= K) & (lane < 2 * K), red, big)
        fde_min = jnp.min(fde_vals, axis=-1, keepdims=True)
        fde_idx = jnp.min(jnp.where(fde_vals <= fde_min, lane, 127),
                          axis=-1, keepdims=True) - K

        # best-mode masks over the 128-lane dec layout (no div/mod: K-1 compares)
        xy = jnp.where(lane >= KP, lane - KP, lane)
        mode_lane = jnp.zeros_like(xy)
        for k in range(1, K):
            mode_lane = mode_lane + (xy >= k * P).astype(jnp.int32)
        in_xy = lane < 2 * KP
        m_ade = jnp.where(in_xy & (mode_lane == ade_idx), 1.0, 0.0)
        m_fde = jnp.where(in_xy & (mode_lane == fde_idx), 1.0, 0.0)

        # collapse the K mode windows into [bx|by|fx|fy] with constant matrices
        traj = (jnp.dot(m_ade * dec, sel_ref[1], preferred_element_type=jnp.float32)
                + jnp.dot(m_fde * dec, sel_ref[2], preferred_element_type=jnp.float32))

        # per-row loss = mean over steps of best-ADE-mode per-step distance (f32)
        lane48 = lax.broadcasted_iota(jnp.int32, (tn, KP), 1)
        mode48 = jnp.zeros_like(lane48)
        for k in range(1, K):
            mode48 = mode48 + (lane48 >= k * P).astype(jnp.int32)
        best_dist = jnp.where(mode48 == ade_idx, dist, 0.0)
        loss_row = jnp.sum(best_dist, axis=-1, keepdims=True) * (1.0 / P)

        traj_ref[...] = traj + jnp.where(lane == LOSS_LANE, loss_row, 0.0)

    return kernel


def _agtfi_fused_call(xin, side, s_mat, params, np_rows, tn):
    ntiles = np_rows // tn
    kernel = _make_kernel(np_rows, tn)
    return pl.pallas_call(
        kernel,
        out_shape=(
            jax.ShapeDtypeStruct((np_rows, LANES), jnp.float32),   # raw decoder output
            jax.ShapeDtypeStruct((np_rows, LANES), jnp.float32),   # [bx|by|fx|fy|loss|pad]
        ),
        grid=(ntiles,),
        in_specs=[
            pl.BlockSpec((np_rows, LANES), lambda i: (0, 0)),      # xin slab (full: S couples rows)
            pl.BlockSpec((tn, LANES), lambda i: (i, 0)),           # side slab (row-tiled)
            pl.BlockSpec((tn, np_rows), lambda i: (i, 0)),         # S strip (row-tiled)
            pl.BlockSpec((LANES, TH), lambda i: (0, 0)),           # encoder block-diag weight
            pl.BlockSpec((WSTACK_ROWS, LANES), lambda i: (0, 0)),  # stacked packed weights
            pl.BlockSpec((1, 4 * LANES), lambda i: (0, 0)),        # packed bias row
            pl.BlockSpec((3, LANES, LANES), lambda i: (0, 0, 0)),  # R / Cade / Cfde constants
        ],
        out_specs=(
            pl.BlockSpec((tn, LANES), lambda i: (i, 0)),
            pl.BlockSpec((tn, LANES), lambda i: (i, 0)),
        ),
        compiler_params=pltpu.CompilerParams(
            dimension_semantics=("parallel",),
            vmem_limit_bytes=32 * 1024 * 1024),
    )(xin, side, s_mat, params["wenc1"], params["wstack"], params["brow"],
      params["selmat"])


# ---------------------------------------------------------------------------
# AGTFI.forward + mdn_loss_nonly (wrapper: preprocessing, packing, unpacking)
# ---------------------------------------------------------------------------
def agtfi_forward(params, inputs, edge_pair):
    (batch_abs_gt, batch_norm_gt, _nei_list_batch, _nei_num_batch,
     batch_split, max_values) = inputs
    obs, P, K = OBS_LEN, PRED_LEN, K_MODES
    n = batch_norm_gt.shape[1]

    batch_abs_gt = batch_abs_gt[:obs, :, :2]

    # velocity preprocessing (exactly as the reference forward)
    train_x = batch_norm_gt[1:obs] - batch_norm_gt[:obs - 1]
    zeros = jnp.zeros((1, n, 2), jnp.float32)
    train_x = jnp.concatenate([zeros, train_x], axis=0)                 # (obs, N, 2)
    xflat = jnp.transpose(train_x, (1, 0, 2)).reshape(n, obs * 2)       # (N, 2T)
    pre_obs = batch_norm_gt[1:obs]                                      # (obs-1, N, 2)
    train_y_gt = jnp.transpose(batch_norm_gt[obs:], (1, 0, 2))          # (N, P, 2)

    abs_last = batch_abs_gt[obs - 1]
    vol_last = batch_abs_gt[obs - 1] - batch_abs_gt[obs - 2]
    absvol = jnp.concatenate([abs_last / max_values[0],
                              vol_last / max_values[0]], axis=-1).astype(jnp.float32)

    # row tiling / padding
    tn = ROW_TILE if n > ROW_TILE else _round_up(max(n, 1), 8)
    np_rows = _round_up(n, tn)

    # packed bf16 MXU input slab: [xflat | absvol | 0 ...]
    xin = jnp.zeros((np_rows, LANES), jnp.float32)
    xin = xin.at[:n, 0:XF_LANES].set(xflat)
    xin = xin.at[:n, AV_LANE0:AV_LANE0 + 4].set(absvol)
    xin = xin.astype(jnp.bfloat16)

    # f32 side slab: [ygt_x tiled K | ygt_y tiled K | gmask broadcast x32]
    side = jnp.zeros((np_rows, LANES), jnp.float32)
    gx = train_y_gt[..., 0]
    gy = train_y_gt[..., 1]
    side = side.at[:n, 0:KP].set(jnp.tile(gx, (1, K)))
    side = side.at[:n, KP:2 * KP].set(jnp.tile(gy, (1, K)))

    # Batch every graph split into one kernel-side matmul: build the (N,N)
    # scatter-add matrix (segment_sum equivalent) and the residual mask.
    # TODO(synk): original GraphTransformer source unavailable; dense stand-in.
    # TODO(synk): for very large N convert S to an edge-list gather (scalar
    # prefetch) instead of an O(N^2) matrix.
    s_mat = jnp.zeros((np_rows, np_rows), jnp.float32)
    gmask = jnp.zeros((np_rows, 1), jnp.float32)
    for (left, right) in batch_split:                                   # python ints
        now_pair = edge_pair[(left, right)][0]                          # (E, 2)
        if now_pair.shape[0] != 0:
            src = now_pair[:, 0].astype(jnp.int32) + left
            dst = now_pair[:, 1].astype(jnp.int32) + left
            s_mat = s_mat.at[dst, src].add(1.0)
            gmask = gmask.at[left:right].set(1.0)
    side = side.at[:, GMASK_LANE0:GMASK_LANE0 + HIDDEN].set(jnp.tile(gmask, (1, HIDDEN)))
    s_mat = s_mat.astype(jnp.bfloat16)

    dec_out, traj = _agtfi_fused_call(xin, side, s_mat, params, np_rows, tn)

    # unpack lane-dense outputs
    l2_loss = jnp.mean(traj[:n, LOSS_LANE])

    px = dec_out[:n, :KP].reshape(n, K, P)
    py = dec_out[:n, KP:2 * KP].reshape(n, K, P)
    loc_phase_2 = jnp.transpose(jnp.stack([px, py], axis=-1), (1, 0, 2, 3))  # (K,N,P,2)

    bx, by = traj[:n, 0:P], traj[:n, P:2 * P]
    fx, fy = traj[:n, 2 * P:3 * P], traj[:n, 3 * P:4 * P]
    sample_ade = jnp.transpose(jnp.stack([bx, by], axis=-1), (1, 0, 2))      # (P, N, 2)
    sample_fde = jnp.transpose(jnp.stack([fx, fy], axis=-1), (1, 0, 2))
    full_pre_tra = [
        jnp.concatenate([pre_obs, sample_ade], axis=0),
        jnp.concatenate([pre_obs, sample_fde], axis=0),
    ]
    return l2_loss, full_pre_tra, loc_phase_2


# ---------------------------------------------------------------------------
# Deterministic parameter init: all folding / packing done ONCE here.
# ---------------------------------------------------------------------------
def init_params(key):
    # TODO(synk): Temperal_Encoder / GRUDecoder / Goal_decoder / GraphTransformer
    # parameters are deterministic dense stand-ins (source not provided).
    ks = jax.random.split(key, 6)
    T, H, P, K = OBS_LEN, HIDDEN, PRED_LEN, K_MODES

    def w(k, shape):
        return jax.random.normal(k, shape, jnp.float32) * 0.1

    enc_w1 = w(ks[0], (2, H))
    enc_b1 = jnp.zeros((H,), jnp.float32)
    enc_w2 = w(ks[1], (T * H, H))
    enc_b2 = jnp.zeros((H,), jnp.float32)
    gt_w = w(ks[2], (2 * (H + 4), H))
    gt_b = jnp.zeros((H,), jnp.float32)
    goal_w = w(ks[3], (2 * H, 2))
    goal_b = jnp.zeros((2,), jnp.float32)
    dec_w = w(ks[4], (H + 2, 2 * K * P))
    dec_b = jnp.zeros((2 * K * P,), jnp.float32)

    # ---- weight splits (avoid all in-kernel lane concatenates) -------------
    wg_h, wg_a = gt_w[:H], gt_w[H:H + 4]
    wg_ah, wg_aa = gt_w[H + 4:2 * H + 4], gt_w[2 * H + 4:]
    wgoal_c, wgoal_h = goal_w[:H], goal_w[H:]
    wdec_h, wdec_c = dec_w[:H], dec_w[H:]

    # temporal-mean (ctx) averaging matrix, folded through the goal decoder
    avg = jnp.tile(jnp.eye(H, dtype=jnp.float32) / T, (T, 1))            # (T*H, H)
    wd_xe_core = avg @ wgoal_c @ wdec_c                                  # (T*H, 96)
    wd_hg_core = wdec_h + wgoal_h @ wdec_c                               # (H, 96)
    bd_core = dec_b + goal_b @ wdec_c                                    # (96,)

    # encoder: per-timestep 2->H linear folded into a block-diagonal weight,
    # embedded in a (128, T*H) slab matching the packed xin input lanes
    w1_block = jnp.zeros((2 * T, T * H), jnp.float32)
    for t in range(T):
        w1_block = w1_block.at[2 * t:2 * t + 2, t * H:(t + 1) * H].set(enc_w1)
    wenc1 = jnp.zeros((LANES, T * H), jnp.float32).at[:2 * T].set(w1_block)
    b1t = jnp.tile(enc_b1, (T,))                                         # (256,)

    # full-scope packed weights: fullpack = xe@wxe_full + xin@wxin_full + bfull
    #   cols 0:32 fproj, 32:64 hidden, 64:96 gt_direct, 96:128 pad
    wxe_full = jnp.zeros((T * H, LANES), jnp.float32)
    wxe_full = wxe_full.at[:, 0:H].set(enc_w2 @ wg_ah)
    wxe_full = wxe_full.at[:, H:2 * H].set(enc_w2)
    wxe_full = wxe_full.at[:, 2 * H:3 * H].set(enc_w2 @ wg_h)
    wxin_full = jnp.zeros((LANES, LANES), jnp.float32)
    wxin_full = wxin_full.at[AV_LANE0:AV_LANE0 + 4, 0:H].set(wg_aa)
    wxin_full = wxin_full.at[AV_LANE0:AV_LANE0 + 4, 2 * H:3 * H].set(wg_a)
    bfull = jnp.zeros((LANES,), jnp.float32)
    bfull = bfull.at[0:H].set(enc_b2 @ wg_ah)
    bfull = bfull.at[H:2 * H].set(enc_b2)
    bfull = bfull.at[2 * H:3 * H].set(gt_b + enc_b2 @ wg_h)

    # decoder weights (goal decoder folded in), padded to 128 output lanes
    wd_xe = jnp.zeros((T * H, LANES), jnp.float32).at[:, :2 * K * P].set(wd_xe_core)
    wd_hg = jnp.zeros((H, LANES), jnp.float32).at[:, :2 * K * P].set(wd_hg_core)
    bd = jnp.zeros((LANES,), jnp.float32).at[:2 * K * P].set(bd_core)

    # one stacked bf16 weight slab + one f32 bias row (fewer, lane-dense DMAs)
    wstack = jnp.concatenate([wxe_full, wxin_full, wd_xe, wd_hg], axis=0)
    brow = jnp.concatenate([b1t, bfull, bd]).reshape(1, 4 * LANES)

    # constant reduction / selection matrices: R (ADE sums + FDE picks),
    # Cade / Cfde (collapse best-mode windows into [bx|by] / [fx|fy])
    r_mat = jnp.zeros((LANES, LANES), jnp.float32)
    c_ade = jnp.zeros((LANES, LANES), jnp.float32)
    c_fde = jnp.zeros((LANES, LANES), jnp.float32)
    eye_p = jnp.eye(P, dtype=jnp.float32)
    for k in range(K):
        r_mat = r_mat.at[k * P:(k + 1) * P, k].set(1.0)
        r_mat = r_mat.at[k * P + P - 1, K + k].set(1.0)
        c_ade = c_ade.at[k * P:(k + 1) * P, 0:P].set(eye_p)
        c_ade = c_ade.at[KP + k * P:KP + (k + 1) * P, P:2 * P].set(eye_p)
        c_fde = c_fde.at[k * P:(k + 1) * P, 2 * P:3 * P].set(eye_p)
        c_fde = c_fde.at[KP + k * P:KP + (k + 1) * P, 3 * P:4 * P].set(eye_p)
    selmat = jnp.stack([r_mat, c_ade, c_fde])                            # (3,128,128)

    return {
        "wenc1": wenc1.astype(jnp.bfloat16),
        "wstack": wstack.astype(jnp.bfloat16),
        "brow": brow,
        "selmat": selmat,
    }


if __name__ == "__main__":
    key = jax.random.PRNGKey(0)
    k1, k2 = jax.random.split(key, 2)

    N_AGENTS = 8
    T_TOTAL = OBS_LEN + PRED_LEN

    batch_abs_gt = jax.random.normal(k1, (T_TOTAL, N_AGENTS, 2), jnp.float32) * 5.0
    batch_norm_gt = jax.random.normal(k2, (T_TOTAL, N_AGENTS, 2), jnp.float32)
    nei_list_batch = jnp.zeros((T_TOTAL, N_AGENTS, N_AGENTS), jnp.float32)  # unused
    nei_num_batch = jnp.zeros((T_TOTAL, N_AGENTS), jnp.float32)             # unused
    batch_split = [(0, N_AGENTS)]
    max_values = jnp.array([10.0, 10.0], jnp.float32)

    edges = jnp.array([[0, 1], [1, 0], [2, 3], [3, 2], [4, 5], [5, 4], [6, 7]],
                      dtype=jnp.int32)
    edge_pair = {(0, N_AGENTS): (edges,)}

    params = init_params(jax.random.PRNGKey(1))
    inputs = (batch_abs_gt, batch_norm_gt, nei_list_batch, nei_num_batch,
              batch_split, max_values)

    l2_loss, full_pre_tra, loc_phase_2 = agtfi_forward(params, inputs, edge_pair)
    jax.block_until_ready((l2_loss, tuple(full_pre_tra), loc_phase_2))
    print("KERNEL_OK")
</pallas_src>

<mosaic_0001>
module attributes {stable_mosaic.version = 11 : i64} {
  func.func @kernel(%arg0: i32, %arg1: memref<8x128xbf16, #tpu.memory_space<vmem>>, %arg2: memref<8x128xf32, #tpu.memory_space<vmem>>, %arg3: memref<8x8xbf16, #tpu.memory_space<vmem>>, %arg4: memref<128x256xbf16, #tpu.memory_space<vmem>>, %arg5: memref<672x128xbf16, #tpu.memory_space<vmem>>, %arg6: memref<1x512xf32, #tpu.memory_space<vmem>>, %arg7: memref<3x128x128xf32, #tpu.memory_space<vmem>>, %arg8: memref<8x128xf32, #tpu.memory_space<vmem>>, %arg9: memref<8x128xf32, #tpu.memory_space<vmem>>) attributes {dimension_semantics = [#tpu.dimension_semantics<parallel>], iteration_bounds = array<i64: 1>, scalar_prefetch = 0 : i64, scratch_operands = 0 : i64, tpu.core_type = #tpu.core_type<tc>, window_params = [{pipeline_mode = #tpu.pipeline_mode<synchronous>, transform_indices = @transform_0, window_bounds = array<i64: 8, 128>}, {transform_indices = @transform_1, window_bounds = array<i64: 8, 128>}, {transform_indices = @transform_2, window_bounds = array<i64: 8, 8>}, {pipeline_mode = #tpu.pipeline_mode<synchronous>, transform_indices = @transform_3, window_bounds = array<i64: 128, 256>}, {pipeline_mode = #tpu.pipeline_mode<synchronous>, transform_indices = @transform_4, window_bounds = array<i64: 672, 128>}, {pipeline_mode = #tpu.pipeline_mode<synchronous>, transform_indices = @transform_5, window_bounds = array<i64: 1, 512>}, {pipeline_mode = #tpu.pipeline_mode<synchronous>, transform_indices = @transform_6, window_bounds = array<i64: 3, 128, 128>}, {transform_indices = @transform_7, window_bounds = array<i64: 8, 128>}, {transform_indices = @transform_8, window_bounds = array<i64: 8, 128>}]} {
    %c0 = arith.constant 0 : index
    %c0_0 = arith.constant 0 : index
    %0 = vector.load %arg1[%c0, %c0_0] : memref<8x128xbf16, #tpu.memory_space<vmem>>, vector<8x128xbf16>
    %c0_1 = arith.constant 0 : index
    %c0_2 = arith.constant 0 : index
    %1 = vector.load %arg4[%c0_1, %c0_2] : memref<128x256xbf16, #tpu.memory_space<vmem>>, vector<128x256xbf16>
    %cst = arith.constant dense<0.000000e+00> : vector<8x256xf32>
    %2 = tpu.matmul %0, %1, %cst {dimension_numbers = #tpu.dot_dimension_numbers<[1], [0], [0], [1], [0, 0, 1, 1], [], []>} : vector<8x128xbf16>, vector<128x256xbf16>, vector<8x256xf32> -> vector<8x256xf32>
    %c0_3 = arith.constant 0 : index
    %c0_4 = arith.constant 0 : index
    %3 = vector.load %arg6[%c0_3, %c0_4] : memref<1x512xf32, #tpu.memory_space<vmem>>, vector<1x256xf32>
    %4 = vector.broadcast %3 : vector<1x256xf32> to vector<8x256xf32>
    %5 = arith.addf %2, %4 : vector<8x256xf32>
    %cst_5 = arith.constant 0.000000e+00 : f32
    %6 = vector.broadcast %cst_5 : f32 to vector<8x256xf32>
    %7 = arith.maximumf %5, %6 : vector<8x256xf32>
    %8 = arith.truncf %7 : vector<8x256xf32> to vector<8x256xbf16>
    %c0_6 = arith.constant 0 : index
    %c0_7 = arith.constant 0 : index
    %9 = vector.load %arg5[%c0_6, %c0_7] : memref<672x128xbf16, #tpu.memory_space<vmem>>, vector<256x128xbf16>
    %cst_8 = arith.constant dense<0.000000e+00> : vector<8x128xf32>
    %10 = tpu.matmul %8, %9, %cst_8 {dimension_numbers = #tpu.dot_dimension_numbers<[1], [0], [0], [1], [0, 0, 1, 1], [], []>} : vector<8x256xbf16>, vector<256x128xbf16>, vector<8x128xf32> -> vector<8x128xf32>
    %c256 = arith.constant 256 : index
    %c0_9 = arith.constant 0 : index
    %11 = vector.load %arg5[%c256, %c0_9] : memref<672x128xbf16, #tpu.memory_space<vmem>>, vector<128x128xbf16>
    %cst_10 = arith.constant dense<0.000000e+00> : vector<8x128xf32>
    %12 = tpu.matmul %0, %11, %cst_10 {dimension_numbers = #tpu.dot_dimension_numbers<[1], [0], [0], [1], [0, 0, 1, 1], [], []>} : vector<8x128xbf16>, vector<128x128xbf16>, vector<8x128xf32> -> vector<8x128xf32>
    %13 = arith.addf %10, %12 : vector<8x128xf32>
    %c0_11 = arith.constant 0 : index
    %c256_12 = arith.constant 256 : index
    %14 = vector.load %arg6[%c0_11, %c256_12] : memref<1x512xf32, #tpu.memory_space<vmem>>, vector<1x128xf32>
    %15 = vector.broadcast %14 : vector<1x128xf32> to vector<8x128xf32>
    %16 = arith.addf %13, %15 : vector<8x128xf32>
    %17 = vector.extract_strided_slice %16 {offsets = [0, 0], sizes = [8, 32], strides = [1, 1]} : vector<8x128xf32> to vector<8x32xf32>
    %18 = arith.truncf %17 : vector<8x32xf32> to vector<8x32xbf16>
    %19 = vector.extract_strided_slice %16 {offsets = [0, 32], sizes = [8, 32], strides = [1, 1]} : vector<8x128xf32> to vector<8x32xf32>
    %20 = vector.extract_strided_slice %16 {offsets = [0, 64], sizes = [8, 32], strides = [1, 1]} : vector<8x128xf32> to vector<8x32xf32>
    %c0_13 = arith.constant 0 : index
    %c0_14 = arith.constant 0 : index
    %21 = vector.load %arg3[%c0_13, %c0_14] : memref<8x8xbf16, #tpu.memory_space<vmem>>, vector<8x8xbf16>
    %cst_15 = arith.constant dense<0.000000e+00> : vector<8x32xf32>
    %22 = tpu.matmul %21, %18, %cst_15 {dimension_numbers = #tpu.dot_dimension_numbers<[1], [0], [0], [1], [0, 0, 1, 1], [], []>} : vector<8x8xbf16>, vector<8x32xbf16>, vector<8x32xf32> -> vector<8x32xf32>
    %c0_16 = arith.constant 0 : index
    %c0_17 = arith.constant 0 : index
    %23 = vector.load %arg2[%c0_16, %c0_17] : memref<8x128xf32, #tpu.memory_space<vmem>>, vector<8x128xf32>
    %24 = vector.extract_strided_slice %23 {offsets = [0, 96], sizes = [8, 32], strides = [1, 1]} : vector<8x128xf32> to vector<8x32xf32>
    %25 = arith.addf %20, %22 : vector<8x32xf32>
    %26 = arith.mulf %24, %25 : vector<8x32xf32>
    %27 = arith.addf %19, %26 : vector<8x32xf32>
    %c384 = arith.constant 384 : index
    %c0_18 = arith.constant 0 : index
    %28 = vector.load %arg5[%c384, %c0_18] : memref<672x128xbf16, #tpu.memory_space<vmem>>, vector<256x128xbf16>
    %cst_19 = arith.constant dense<0.000000e+00> : vector<8x128xf32>
    %29 = tpu.matmul %8, %28, %cst_19 {dimension_numbers = #tpu.dot_dimension_numbers<[1], [0], [0], [1], [0, 0, 1, 1], [], []>} : vector<8x256xbf16>, vector<256x128xbf16>, vector<8x128xf32> -> vector<8x128xf32>
    %30 = arith.truncf %27 : vector<8x32xf32> to vector<8x32xbf16>
    %c640 = arith.constant 640 : index
    %c0_20 = arith.constant 0 : index
    %31 = vector.load %arg5[%c640, %c0_20] : memref<672x128xbf16, #tpu.memory_space<vmem>>, vector<32x128xbf16>
    %cst_21 = arith.constant dense<0.000000e+00> : vector<8x128xf32>
    %32 = tpu.matmul %30, %31, %cst_21 {dimension_numbers = #tpu.dot_dimension_numbers<[1], [0], [0], [1], [0, 0, 1, 1], [], []>} : vector<8x32xbf16>, vector<32x128xbf16>, vector<8x128xf32> -> vector<8x128xf32>
    %33 = arith.addf %29, %32 : vector<8x128xf32>
    %c0_22 = arith.constant 0 : index
    %c384_23 = arith.constant 384 : index
    %34 = vector.load %arg6[%c0_22, %c384_23] : memref<1x512xf32, #tpu.memory_space<vmem>>, vector<1x128xf32>
    %35 = vector.broadcast %34 : vector<1x128xf32> to vector<8x128xf32>
    %36 = arith.addf %33, %35 : vector<8x128xf32>
    %c0_24 = arith.constant 0 : index
    %c0_25 = arith.constant 0 : index
    %37 = vector.load %arg8[%c0_24, %c0_25] : memref<8x128xf32, #tpu.memory_space<vmem>>, vector<8x128xf32>
    tpu.vector_store %arg8[%c0_24, %c0_25], %36 {strides = array<i32>} : memref<8x128xf32, #tpu.memory_space<vmem>>, vector<8x128xf32>,
    %38 = arith.subf %36, %23 : vector<8x128xf32>
    %39 = vector.extract_strided_slice %38 {offsets = [0, 0], sizes = [8, 48], strides = [1, 1]} : vector<8x128xf32> to vector<8x48xf32>
    %40 = vector.extract_strided_slice %38 {offsets = [0, 48], sizes = [8, 48], strides = [1, 1]} : vector<8x128xf32> to vector<8x48xf32>
    %41 = arith.mulf %39, %39 : vector<8x48xf32>
    %42 = arith.mulf %40, %40 : vector<8x48xf32>
    %43 = arith.addf %41, %42 : vector<8x48xf32>
    %44 = math.sqrt %43 : vector<8x48xf32>
    %c0_26 = arith.constant 0 : index
    %c0_27 = arith.constant 0 : index
    %c0_28 = arith.constant 0 : index
    %45 = vector.load %arg7[%c0_26, %c0_27, %c0_28] : memref<3x128x128xf32, #tpu.memory_space<vmem>>, vector<1x128x128xf32>
    %46 = vector.shape_cast %45 : vector<1x128x128xf32> to vector<128x128xf32>
    %47 = vector.extract_strided_slice %46 {offsets = [0, 0], sizes = [48, 128], strides = [1, 1]} : vector<128x128xf32> to vector<48x128xf32>
    %cst_29 = arith.constant dense<0.000000e+00> : vector<8x128xf32>
    %48 = tpu.matmul %44, %47, %cst_29 {dimension_numbers = #tpu.dot_dimension_numbers<[1], [0], [0], [1], [0, 0, 1, 1], [], []>} : vector<8x48xf32>, vector<48x128xf32>, vector<8x128xf32> -> vector<8x128xf32>
    %49 = tpu.iota {dimensions = array<i32: 1>} : vector<8x128xi32>
    %c4_i32 = arith.constant 4 : i32
    %50 = vector.broadcast %c4_i32 : i32 to vector<8x128xi32>
    %51 = arith.cmpi slt, %49, %50 : vector<8x128xi32>
    %cst_30 = arith.constant 3.000000e+38 : f32
    %52 = vector.broadcast %cst_30 : f32 to vector<8x128xf32>
    %53 = arith.select %51, %48, %52 : vector<8x128xi1>, vector<8x128xf32>
    %cst_31 = arith.constant dense<0x7F800000> : vector<8xf32>
    %54 = vector.multi_reduction <minimumf>, %53, %cst_31 [1] : vector<8x128xf32> to vector<8xf32>
    %55 = vector.shape_cast %54 : vector<8xf32> to vector<8x1xf32>
    %56 = vector.broadcast %55 : vector<8x1xf32> to vector<8x128xf32>
    %57 = arith.cmpf ole, %53, %56 : vector<8x128xf32>
    %c127_i32 = arith.constant 127 : i32
    %58 = vector.broadcast %c127_i32 : i32 to vector<8x128xi32>
    %59 = arith.select %57, %49, %58 : vector<8x128xi1>, vector<8x128xi32>
    %cst_32 = arith.constant dense<2147483647> : vector<8xi32>
    %60 = vector.multi_reduction <minsi>, %59, %cst_32 [1] : vector<8x128xi32> to vector<8xi32>
    %61 = vector.shape_cast %60 : vector<8xi32> to vector<8x1xi32>
    %c4_i32_33 = arith.constant 4 : i32
    %62 = vector.broadcast %c4_i32_33 : i32 to vector<8x128xi32>
    %63 = arith.cmpi sge, %49, %62 : vector<8x128xi32>
    %c8_i32 = arith.constant 8 : i32
    %64 = vector.broadcast %c8_i32 : i32 to vector<8x128xi32>
    %65 = arith.cmpi slt, %49, %64 : vector<8x128xi32>
    %66 = arith.andi %63, %65 : vector<8x128xi1>
    %cst_34 = arith.constant 3.000000e+38 : f32
    %67 = vector.broadcast %cst_34 : f32 to vector<8x128xf32>
    %68 = arith.select %66, %48, %67 : vector<8x128xi1>, vector<8x128xf32>
    %cst_35 = arith.constant dense<0x7F800000> : vector<8xf32>
    %69 = vector.multi_reduction <minimumf>, %68, %cst_35 [1] : vector<8x128xf32> to vector<8xf32>
    %70 = vector.shape_cast %69 : vector<8xf32> to vector<8x1xf32>
    %71 = vector.broadcast %70 : vector<8x1xf32> to vector<8x128xf32>
    %72 = arith.cmpf ole, %68, %71 : vector<8x128xf32>
    %c127_i32_36 = arith.constant 127 : i32
    %73 = vector.broadcast %c127_i32_36 : i32 to vector<8x128xi32>
    %74 = arith.select %72, %49, %73 : vector<8x128xi1>, vector<8x128xi32>
    %cst_37 = arith.constant dense<2147483647> : vector<8xi32>
    %75 = vector.multi_reduction <minsi>, %74, %cst_37 [1] : vector<8x128xi32> to vector<8xi32>
    %76 = vector.shape_cast %75 : vector<8xi32> to vector<8x1xi32>
    %c4_i32_38 = arith.constant 4 : i32
    %77 = vector.broadcast %c4_i32_38 : i32 to vector<8x1xi32>
    %78 = arith.subi %76, %77 : vector<8x1xi32>
    %c48_i32 = arith.constant 48 : i32
    %79 = vector.broadcast %c48_i32 : i32 to vector<8x128xi32>
    %80 = arith.cmpi sge, %49, %79 : vector<8x128xi32>
    %c48_i32_39 = arith.constant 48 : i32
    %81 = vector.broadcast %c48_i32_39 : i32 to vector<8x128xi32>
    %82 = arith.subi %49, %81 : vector<8x128xi32>
    %83 = arith.select %80, %82, %49 : vector<8x128xi1>, vector<8x128xi32>
    %c0_i32 = arith.constant 0 : i32
    %84 = vector.broadcast %c0_i32 : i32 to vector<8x128xi32>
    %c12_i32 = arith.constant 12 : i32
    %85 = vector.broadcast %c12_i32 : i32 to vector<8x128xi32>
    %86 = arith.cmpi sge, %83, %85 : vector<8x128xi32>
    %87 = arith.extui %86 : vector<8x128xi1> to vector<8x128xi32>
    %88 = arith.addi %84, %87 : vector<8x128xi32>
    %c24_i32 = arith.constant 24 : i32
    %89 = vector.broadcast %c24_i32 : i32 to vector<8x128xi32>
    %90 = arith.cmpi sge, %83, %89 : vector<8x128xi32>
    %91 = arith.extui %90 : vector<8x128xi1> to vector<8x128xi32>
    %92 = arith.addi %88, %91 : vector<8x128xi32>
    %c36_i32 = arith.constant 36 : i32
    %93 = vector.broadcast %c36_i32 : i32 to vector<8x128xi32>
    %94 = arith.cmpi sge, %83, %93 : vector<8x128xi32>
    %95 = arith.extui %94 : vector<8x128xi1> to vector<8x128xi32>
    %96 = arith.addi %92, %95 : vector<8x128xi32>
    %c96_i32 = arith.constant 96 : i32
    %97 = vector.broadcast %c96_i32 : i32 to vector<8x128xi32>
    %98 = arith.cmpi slt, %49, %97 : vector<8x128xi32>
    %99 = vector.broadcast %61 : vector<8x1xi32> to vector<8x128xi32>
    %100 = arith.cmpi eq, %96, %99 : vector<8x128xi32>
    %101 = arith.andi %98, %100 : vector<8x128xi1>
    %cst_40 = arith.constant 1.000000e+00 : f32
    %cst_41 = arith.constant 0.000000e+00 : f32
    %102 = vector.broadcast %cst_40 : f32 to vector<8x128xf32>
    %103 = vector.broadcast %cst_41 : f32 to vector<8x128xf32>
    %104 = arith.select %101, %102, %103 : vector<8x128xi1>, vector<8x128xf32>
    %105 = vector.broadcast %78 : vector<8x1xi32> to vector<8x128xi32>
    %106 = arith.cmpi eq, %96, %105 : vector<8x128xi32>
    %107 = arith.andi %98, %106 : vector<8x128xi1>
    %cst_42 = arith.constant 1.000000e+00 : f32
    %cst_43 = arith.constant 0.000000e+00 : f32
    %108 = vector.broadcast %cst_42 : f32 to vector<8x128xf32>
    %109 = vector.broadcast %cst_43 : f32 to vector<8x128xf32>
    %110 = arith.select %107, %108, %109 : vector<8x128xi1>, vector<8x128xf32>
    %111 = arith.mulf %104, %36 : vector<8x128xf32>
    %c1 = arith.constant 1 : index
    %c0_44 = arith.constant 0 : index
    %c0_45 = arith.constant 0 : index
    %112 = vector.load %arg7[%c1, %c0_44, %c0_45] : memref<3x128x128xf32, #tpu.memory_space<vmem>>, vector<1x128x128xf32>
    %113 = vector.shape_cast %112 : vector<1x128x128xf32> to vector<128x128xf32>
    %cst_46 = arith.constant dense<0.000000e+00> : vector<8x128xf32>
    %114 = tpu.matmul %111, %113, %cst_46 {dimension_numbers = #tpu.dot_dimension_numbers<[1], [0], [0], [1], [0, 0, 1, 1], [], []>} : vector<8x128xf32>, vector<128x128xf32>, vector<8x128xf32> -> vector<8x128xf32>
    %115 = arith.mulf %110, %36 : vector<8x128xf32>
    %c2 = arith.constant 2 : index
    %c0_47 = arith.constant 0 : index
    %c0_48 = arith.constant 0 : index
    %116 = vector.load %arg7[%c2, %c0_47, %c0_48] : memref<3x128x128xf32, #tpu.memory_space<vmem>>, vector<1x128x128xf32>
    %117 = vector.shape_cast %116 : vector<1x128x128xf32> to vector<128x128xf32>
    %cst_49 = arith.constant dense<0.000000e+00> : vector<8x128xf32>
    %118 = tpu.matmul %115, %117, %cst_49 {dimension_numbers = #tpu.dot_dimension_numbers<[1], [0], [0], [1], [0, 0, 1, 1], [], []>} : vector<8x128xf32>, vector<128x128xf32>, vector<8x128xf32> -> vector<8x128xf32>
    %119 = arith.addf %114, %118 : vector<8x128xf32>
    %120 = tpu.iota {dimensions = array<i32: 1>} : vector<8x48xi32>
    %c0_i32_50 = arith.constant 0 : i32
    %121 = vector.broadcast %c0_i32_50 : i32 to vector<8x48xi32>
    %c12_i32_51 = arith.constant 12 : i32
    %122 = vector.broadcast %c12_i32_51 : i32 to vector<8x48xi32>
    %123 = arith.cmpi sge, %120, %122 : vector<8x48xi32>
    %124 = arith.extui %123 : vector<8x48xi1> to vector<8x48xi32>
    %125 = arith.addi %121, %124 : vector<8x48xi32>
    %c24_i32_52 = arith.constant 24 : i32
    %126 = vector.broadcast %c24_i32_52 : i32 to vector<8x48xi32>
    %127 = arith.cmpi sge, %120, %126 : vector<8x48xi32>
    %128 = arith.extui %127 : vector<8x48xi1> to vector<8x48xi32>
    %129 = arith.addi %125, %128 : vector<8x48xi32>
    %c36_i32_53 = arith.constant 36 : i32
    %130 = vector.broadcast %c36_i32_53 : i32 to vector<8x48xi32>
    %131 = arith.cmpi sge, %120, %130 : vector<8x48xi32>
    %132 = arith.extui %131 : vector<8x48xi1> to vector<8x48xi32>
    %133 = arith.addi %129, %132 : vector<8x48xi32>
    %134 = vector.broadcast %61 : vector<8x1xi32> to vector<8x48xi32>
    %135 = arith.cmpi eq, %133, %134 : vector<8x48xi32>
    %cst_54 = arith.constant 0.000000e+00 : f32
    %136 = vector.broadcast %cst_54 : f32 to vector<8x48xf32>
    %137 = arith.select %135, %44, %136 : vector<8x48xi1>, vector<8x48xf32>
    %cst_55 = arith.constant dense<0.000000e+00> : vector<8xf32>
    %138 = vector.multi_reduction <add>, %137, %cst_55 [1] : vector<8x48xf32> to vector<8xf32>
    %139 = vector.shape_cast %138 : vector<8xf32> to vector<8x1xf32>
    %cst_56 = arith.constant 0.0833333358 : f32
    %140 = vector.broadcast %cst_56 : f32 to vector<8x1xf32>
    %141 = arith.mulf %139, %140 : vector<8x1xf32>
    %c48_i32_57 = arith.constant 48 : i32
    %142 = vector.broadcast %c48_i32_57 : i32 to vector<8x128xi32>
    %143 = arith.cmpi eq, %49, %142 : vector<8x128xi32>
    %cst_58 = arith.constant 0.000000e+00 : f32
    %144 = vector.shape_cast %141 : vector<8x1xf32> to vector<8x1xf32>
    %145 = vector.broadcast %144 : vector<8x1xf32> to vector<8x128xf32>
    %146 = vector.broadcast %cst_58 : f32 to vector<8x128xf32>
    %147 = arith.select %143, %145, %146 : vector<8x128xi1>, vector<8x128xf32>
    %148 = arith.addf %119, %147 : vector<8x128xf32>
    %c0_59 = arith.constant 0 : index
    %c0_60 = arith.constant 0 : index
    %149 = vector.load %arg9[%c0_59, %c0_60] : memref<8x128xf32, #tpu.memory_space<vmem>>, vector<8x128xf32>
    tpu.vector_store %arg9[%c0_59, %c0_60], %148 {strides = array<i32>} : memref<8x128xf32, #tpu.memory_space<vmem>>, vector<8x128xf32>,
    return
  }
  func.func @transform_0(%arg0: i32) -> (i32, i32) {
    %c0_i32 = arith.constant 0 : i32
    %c0_i32_0 = arith.constant 0 : i32
    %c0_i32_1 = arith.constant 0 : i32
    return %c0_i32, %c0_i32_0 : i32, i32
  }
  func.func @transform_1(%arg0: i32) -> (i32, i32) {
    %c0_i32 = arith.constant 0 : i32
    %c0_i32_0 = arith.constant 0 : i32
    return %arg0, %c0_i32 : i32, i32
  }
  func.func @transform_2(%arg0: i32) -> (i32, i32) {
    %c0_i32 = arith.constant 0 : i32
    %c0_i32_0 = arith.constant 0 : i32
    return %arg0, %c0_i32 : i32, i32
  }
  func.func @transform_3(%arg0: i32) -> (i32, i32) {
    %c0_i32 = arith.constant 0 : i32
    %c0_i32_0 = arith.constant 0 : i32
    %c0_i32_1 = arith.constant 0 : i32
    return %c0_i32, %c0_i32_0 : i32, i32
  }
  func.func @transform_4(%arg0: i32) -> (i32, i32) {
    %c0_i32 = arith.constant 0 : i32
    %c0_i32_0 = arith.constant 0 : i32
    %c0_i32_1 = arith.constant 0 : i32
    return %c0_i32, %c0_i32_0 : i32, i32
  }
  func.func @transform_5(%arg0: i32) -> (i32, i32) {
    %c0_i32 = arith.constant 0 : i32
    %c0_i32_0 = arith.constant 0 : i32
    %c0_i32_1 = arith.constant 0 : i32
    return %c0_i32, %c0_i32_0 : i32, i32
  }
  func.func @transform_6(%arg0: i32) -> (i32, i32, i32) {
    %c0_i32 = arith.constant 0 : i32
    %c0_i32_0 = arith.constant 0 : i32
    %c0_i32_1 = arith.constant 0 : i32
    %c0_i32_2 = arith.constant 0 : i32
    return %c0_i32, %c0_i32_0, %c0_i32_1 : i32, i32, i32
  }
  func.func @transform_7(%arg0: i32) -> (i32, i32) {
    %c0_i32 = arith.constant 0 : i32
    %c0_i32_0 = arith.constant 0 : i32
    return %arg0, %c0_i32 : i32, i32
  }
  func.func @transform_8(%arg0: i32) -> (i32, i32) {
    %c0_i32 = arith.constant 0 : i32
    %c0_i32_0 = arith.constant 0 : i32
    return %arg0, %c0_i32 : i32, i32
  }
}

</mosaic_0001>

<bundles_post_ra>
// kernel: tpu_custom_call.1
= control target key start
LH: loop header
LB: loop body
LE: loop exit
PB: predicated region body
PF: predicated region fallthrough
CT: control target
= control target key end

     0   :  { %14 = vsyncpa [#allocation3], 0  ;;  %s2089_s0 = inlined_call_operand.hbm [shape: bf16[8,128], index: 0, kind: input, shape index: {}]   ;;  %s2090_s1 = inlined_call_operand.hbm [shape: f32[8,128], index: 1, kind: input, shape index: {}]   ;;  %s2091_s2 = inlined_call_operand.vmem [shape: bf16[8,8], index: 2, kind: input, shape index: {}]   ;;  %s2092_s3 = inlined_call_operand.hbm [shape: bf16[128,256], index: 3, kind: input, shape index: {}]   ;;  %s2093_s4 = inlined_call_operand.hbm [shape: bf16[672,128], index: 4, kind: input, shape index: {}]   ;;  %s2094_s5 = inlined_call_operand.vmem [shape: f32[1,512], index: 5, kind: input, shape index: {}]   ;;  %s2095_s6 = inlined_call_operand.hbm [shape: f32[3,128,128], index: 6, kind: input, shape index: {}]   ;;  %s2096_s7 = inlined_call_operand.hbm [shape: f32[8,128], index: 7, kind: output, shape index: {0}]   ;;  %s2097_s8 = inlined_call_operand.hbm [shape: f32[8,128], index: 8, kind: output, shape index: {1}]  }
   0x1   :  { %15 = vsyncpa [#allocation6], 0 }
   0x2   :  { %16 = vsyncpa [#allocation9], 0 }
   0x3   :  { %17 = vsyncpa [#allocation4], 0 }
   0x4   :  { %18 = vsyncpa [#allocation13], 0  ;;  %s1808_s27 = smov [#allocation5]   ;;  %s1809_s29 = smov [#allocation8]  }
   0x5   :  { %s35_s28 = sshll.u32 %s1808_s27, 4  ;;  %s58_s30 = sshll.u32 %s1809_s29, 4  ;;  %s36_s28 = int_to_ptr.vmem [resolvable:$true] %s35_s28  ;;  %s1871_s30 = int_to_ptr.vmem [resolvable:$true] %s58_s30 }
   0x6   :  { %s1644_s11 = scalar_lea.hbm %s2090_s1, 128 }
   0x7   :  { %p1645_p0 = scmp.ne.s32.totalorder %s2090_s1, %s1644_s11  ;;  %p1648_p1 = scmp.lt.u32.totalorder %s1644_s11, %s2090_s1 }
   0x9   :  { %p1650_p2 = pnand %p1648_p1, %p1645_p0 }
   0xb   :  { %1653 = shalt.err (!%p1650_p2)
}
   0xc   :  { %s1654_s16 = scalar_lea.vmem %s36_s28, 128  ;;  %p1659_p4 = scmp.lt.s32.totalorder %s36_s28, %s36_s28 }
   0xd   :  { %p1655_p3 = scmp.ne.s32.totalorder %s36_s28, %s1654_s16  ;;  %p1660_p5 = scmp.lt.s32.totalorder %s1654_s16, %s1654_s16 }
   0xf   :  { %p1661_p6 = por %p1660_p5, %p1659_p4 }
  0x11   :  { %p1662_p7 = pnand %p1661_p6, %p1655_p3 }
  0x13   :  { %1665 = shalt.err (!%p1662_p7)
}
  0x14   :  { %38 = dma.hbm_to_vmem [thread:$0]  %s2090_s1, 128, %s36_s28, [#allocation6]  }
  0x15   :  { %s1666_s21 = scalar_lea.hbm %s2093_s4, 5376 }
  0x16   :  { %p1667_p8 = scmp.ne.s32.totalorder %s2093_s4, %s1666_s21  ;;  %p1670_p9 = scmp.lt.u32.totalorder %s1666_s21, %s2093_s4 }
  0x18   :  { %p1672_p10 = pnand %p1670_p9, %p1667_p8 }
  0x1a   :  { %1675 = shalt.err (!%p1672_p10)
}
  0x1b   :  { %s1676_s26 = scalar_lea.vmem %s1871_s30, 5376  ;;  %p1681_p12 = scmp.lt.s32.totalorder %s1871_s30, %s1871_s30 }
  0x1c   :  { %p1677_p11 = scmp.ne.s32.totalorder %s1871_s30, %s1676_s26  ;;  %p1682_p13 = scmp.lt.s32.totalorder %s1676_s26, %s1676_s26 }
  0x1e   :  { %p1683_p0 = por %p1682_p13, %p1681_p12 }
  0x20   :  { %p1684_p1 = pnand %p1683_p0, %p1677_p11 }
  0x22   :  { %1687 = shalt.err (!%p1684_p1)
}
  0x23   :  { %s1810_s1 = smov 64   ;;  %s1811_s27 = smov 4  }
  0x24   :  { %64 = dma.hbm_to_vmem [thread:$0]  %s2093_s4, 5376, %s1871_s30, [#allocation9], %s1810_s1, %s1810_s1, %s1811_s27  }
  0x25   :  { %s1812_s9 = smov [#allocation2]   ;;  %s1813_s11 = smov [#allocation7]  }
  0x26   :  { %s25_s10 = sshll.u32 %s1812_s9, 4  ;;  %s46_s12 = sshll.u32 %s1813_s11, 4  ;;  %s26_s10 = int_to_ptr.vmem [resolvable:$true] %s25_s10  ;;  %s1904_s12 = int_to_ptr.vmem [resolvable:$true] %s46_s12 }
  0x27   :  { %s1688_s15 = scalar_lea.hbm %s2089_s0, 64 }
  0x28   :  { %p1689_p2 = scmp.ne.s32.totalorder %s2089_s0, %s1688_s15  ;;  %p1692_p3 = scmp.lt.u32.totalorder %s1688_s15, %s2089_s0 }
  0x2a   :  { %p1694_p4 = pnand %p1692_p3, %p1689_p2 }
  0x2c   :  { %1697 = shalt.err (!%p1694_p4)
}
  0x2d   :  { %s1698_s4 = scalar_lea.vmem %s26_s10, 64  ;;  %p1703_p6 = scmp.lt.s32.totalorder %s26_s10, %s26_s10 }
  0x2e   :  { %p1699_p5 = scmp.ne.s32.totalorder %s26_s10, %s1698_s4  ;;  %p1704_p7 = scmp.lt.s32.totalorder %s1698_s4, %s1698_s4 }
  0x30   :  { %p1705_p8 = por %p1704_p7, %p1703_p6 }
  0x32   :  { %p1706_p9 = pnand %p1705_p8, %p1699_p5 }
  0x34   :  { %1709 = shalt.err (!%p1706_p9)
}
  0x35   :  { %28 = dma.hbm_to_vmem [thread:$0]  %s2089_s0, 64, %s26_s10, [#allocation3]  }
  0x36   :  { %s1710_s23 = scalar_lea.hbm %s2092_s3, 2048 }
  0x37   :  { %p1711_p10 = scmp.ne.s32.totalorder %s2092_s3, %s1710_s23  ;;  %p1714_p11 = scmp.lt.u32.totalorder %s1710_s23, %s2092_s3 }
  0x39   :  { %p1716_p12 = pnand %p1714_p11, %p1711_p10 }
  0x3b   :  { %1719 = shalt.err (!%p1716_p12)
}
  0x3c   :  { %s1720_s28 = scalar_lea.vmem %s1904_s12, 2048  ;;  %p1725_p0 = scmp.lt.s32.totalorder %s1904_s12, %s1904_s12 }
  0x3d   :  { %p1721_p13 = scmp.ne.s32.totalorder %s1904_s12, %s1720_s28  ;;  %p1726_p1 = scmp.lt.s32.totalorder %s1720_s28, %s1720_s28 }
  0x3f   :  { %p1727_p2 = por %p1726_p1, %p1725_p0 }
  0x41   :  { %p1728_p3 = pnand %p1727_p2, %p1721_p13 }
  0x43   :  { %1731 = shalt.err (!%p1728_p3)
}
  0x44   :  { %s1814_s0 = smov 128   ;;  %s1815_s29 = smov 8  }
  0x45   :  { %52 = dma.hbm_to_vmem [thread:$0]  %s2092_s3, 2048, %s1904_s12, [#allocation6], %s1814_s0, %s1814_s0, %s1815_s29  }
  0x46   :  { %s1816_s11 = smov [#allocation10]   ;;  %s1732_s16 = scalar_lea.hbm %s2095_s6, 6144 }
  0x47   :  { %s72_s13 = sshll.u32 %s1816_s11, 4  ;;  %p1733_p4 = scmp.ne.s32.totalorder %s2095_s6, %s1732_s16  ;;  %s73_s13 = int_to_ptr.vmem [resolvable:$true] %s72_s13 }
  0x48   :  { %p1736_p5 = scmp.lt.u32.totalorder %s1732_s16, %s2095_s6 }
  0x4a   :  { %p1738_p6 = pnand %p1736_p5, %p1733_p4 }
  0x4c   :  { %1741 = shalt.err (!%p1738_p6)
}
  0x4d   :  { %s1742_s30 = scalar_lea.vmem %s73_s13, 6144  ;;  %p1747_p8 = scmp.lt.s32.totalorder %s73_s13, %s73_s13 }
  0x4e   :  { %p1743_p7 = scmp.ne.s32.totalorder %s73_s13, %s1742_s30  ;;  %p1748_p9 = scmp.lt.s32.totalorder %s1742_s30, %s1742_s30 }
  0x50   :  { %p1749_p10 = por %p1748_p9, %p1747_p8 }
  0x52   :  { %p1750_p11 = pnand %p1749_p10, %p1743_p7 }
  0x54   :  { %1753 = shalt.err (!%p1750_p11)
}
  0x55   :  { %78 = dma.hbm_to_vmem [thread:$0]  %s2095_s6, 6144, %s73_s13, [#allocation9], %s1814_s0, %s1814_s0, %s1815_s29  }
  0x56   :  { %1798 = dma.done.wait [#allocation3], 64  }
  0x57   :  { %1799 = vsyncadd [#allocation3], 4294967232 }
  0x58   :  { %1800 = dma.done.wait [#allocation6], 2176  }
  0x59   :  { %1801 = vsyncadd [#allocation6], 4294965120 }
  0x5a   :  { %1802 = dma.done.wait [#allocation9], 11520  }
  0x5b   :  { %1803 = vsyncadd [#allocation9], 4294955776  ;;  %v1817_v0 = vmov 0   ;;  %v1818_v1 = vmov 0.0   ;;  %v1576_v2 = vld [vmem:[#allocation7 + $0x4] ss:$8 sps:$4 sm:$0xff]   ;;  %v114_v43 = vlaneseq }
  0x5c   :  { %236 = vmatprep.mubr.bf16.mxu0 %v1817_v0  ;;  %1382 = vmatprep.subr.bf16.mxu1 %v1818_v1  ;;  %v1578_v3 = vld [vmem:[#allocation7] ss:$8 sps:$4 sm:$0xff]   ;;  %v1579_v4 = vld [vmem:[#allocation7 + $0x14] ss:$8 sps:$4 sm:$0xff]   ;;  %v1581_v5 = vld [vmem:[#allocation7 + $0x10] ss:$8 sps:$4 sm:$0xff]  }
  0x5d   :  { %204 = vmatprep.subr.bf16.mxu0 %v1576_v2  ;;  %v1582_v6 = vld [vmem:[#allocation7 + $0x24] ss:$8 sps:$4 sm:$0xff]   ;;  %v1584_v7 = vld [vmem:[#allocation7 + $0x20] ss:$8 sps:$4 sm:$0xff]   ;;  %v1585_v8 = vld [vmem:[#allocation7 + $0x34] ss:$8 sps:$4 sm:$0xff]  }
  0x5e   :  { %205 = vmatpush1.bf16.msra.mxu0 %v1578_v3  ;;  %v1587_v9 = vld [vmem:[#allocation7 + $0x30] ss:$8 sps:$4 sm:$0xff]   ;;  %v1588_v10 = vld [vmem:[#allocation7 + $0x44] ss:$8 sps:$4 sm:$0xff]   ;;  %v1590_v12 = vld [vmem:[#allocation7 + $0x40] ss:$8 sps:$4 sm:$0xff]  }
  0x5f   :  { %206 = vmatprep.subr.bf16.mxu0 %v1579_v4  ;;  %v1601_v11 = vld [vmem:[#allocation8 + $0x80] sm:$0xff]   ;;  %v1604_v13 = vld [vmem:[#allocation8 + $0x88] sm:$0xff]   ;;  %v1591_v14 = vld [vmem:[#allocation7 + $0x54] ss:$8 sps:$4 sm:$0xff]   ;;  %vm1819_vm0 = vmmov 0   ;;  %v115_v44 = vshrl.u32 %v114_v43, 7 }
  0x60   :  { %1383 = vmatpush3.bf16.msra.mxu1 %v1601_v11  ;;  %v1607_v15 = vld [vmem:[#allocation8 + $0x90] sm:$0xff]   ;;  %v1594_v17 = vld [vmem:[#allocation7 + $0x64] ss:$8 sps:$4 sm:$0xff]   ;;  %v1610_v18 = vld [vmem:[#allocation8 + $0x98] sm:$0xff]   ;;  %1398 = vmatprep.mubr.msk.bf16.mxu1 %vm1819_vm0, %v1818_v1  ;;  %vm535_vm1 = vcmask 1043456   ;;  %vm531_vm2 = vcmask 64512  }
  0x61   :  { %1384 = vmatprep.subr.bf16.mxu1 %v1818_v1  ;;  %v1593_v16 = vld [vmem:[#allocation7 + $0x50] ss:$8 sps:$4 sm:$0xff]   ;;  %v1596_v19 = vld [vmem:[#allocation7 + $0x60] ss:$8 sps:$4 sm:$0xff]   ;;  %v1597_v20 = vld [vmem:[#allocation7 + $0x74] ss:$8 sps:$4 sm:$0xff]  }
  0x62   :  { %207 = vmatpush1.bf16.msra.mxu0 %v1581_v5  ;;  %v1613_v21 = vld [vmem:[#allocation8 + $0xa0] sm:$0xff]   ;;  %v1599_v22 = vld [vmem:[#allocation7 + $0x70] ss:$8 sps:$4 sm:$0xff]   ;;  %v95_v24 = vld [vmem:[#allocation2] sm:$0xf]  ;;  %v116_v45 = vsub.s32 0, %v115_v44 }
  0x63   :  { %208 = vmatprep.subr.bf16.mxu0 %v1582_v6  ;;  %v1600_v23 = vld [vmem:[#allocation8 + $0x40] sm:$0xff]   ;;  %v1616_v26 = vld [vmem:[#allocation8 + $0xa8] sm:$0xff]   ;;  %v1606_v29 = vld [vmem:[#allocation8 + $0x50] sm:$0xff]   ;;  %v120_v47 = vsub.s32 1, %v115_v44  ;;  %s1820_s25 = smov 32   ;;  %vm647_vm3 = vcmask 261120  }
  0x64   :  { %1385 = vmatpush3.bf16.msra.mxu1 %v1604_v13  ;;  %v1602_v25 = vld [vmem:[#allocation8] sm:$0xff]   ;;  %v1603_v27 = vld [vmem:[#allocation8 + $0x48] sm:$0xff]   ;;  %v1608_v30 = vld [vmem:[#allocation8 + $0x10] sm:$0xff]   ;;  %vm856_vm5 = vcmask 392192   ;;  %s1824_s27 = smov [#allocation11]  }
  0x65   :  { %1386 = vmatprep.subr.bf16.mxu1 %v1818_v1  ;;  %v1605_v28 = vld [vmem:[#allocation8 + $0x8] sm:$0xff]   ;;  %v1609_v31 = vld [vmem:[#allocation8 + $0x58] sm:$0xff]   ;;  %v1612_v33 = vld [vmem:[#allocation8 + $0x60] sm:$0xff]   ;;  %s1193_s28 = sshll.u32 %s1824_s27, 4  ;;  %s1194_s28 = int_to_ptr.vmem [resolvable:$true] %s1193_s28 }
  0x66   :  { %209 = vmatpush1.bf16.msra.mxu0 %v1584_v7  ;;  %v1611_v32 = vld [vmem:[#allocation8 + $0x18] sm:$0xff]   ;;  %v1614_v34 = vld [vmem:[#allocation8 + $0x20] sm:$0xff]   ;;  %v1615_v35 = vld [vmem:[#allocation8 + $0x68] sm:$0xff]   ;;  %s1754_s0 = scalar_lea.vmem %s1194_s28, 128  ;;  %p1759_p13 = scmp.lt.s32.totalorder %s1194_s28, %s1194_s28 }
  0x67   :  { %210 = vmatprep.subr.bf16.mxu0 %v1585_v8  ;;  %v1617_v36 = vld [vmem:[#allocation8 + $0x28] sm:$0xff]   ;;  %v1618_v37 = vld [vmem:[#allocation8 + $0x70] sm:$0xff]   ;;  %v1621_v40 = vld [vmem:[#allocation8 + $0x78] sm:$0xff]   ;;  %p1755_p12 = scmp.ne.s32.totalorder %s1194_s28, %s1754_s0  ;;  %p1760_p0 = scmp.lt.s32.totalorder %s1754_s0, %s1754_s0 }
  0x68   :  { %1387 = vmatpush3.bf16.msra.mxu1 %v1607_v15  ;;  %v1619_v38 = vld [vmem:[#allocation8 + $0xb0] sm:$0xff]   ;;  %v1622_v41 = vld [vmem:[#allocation8 + $0xb8] sm:$0xff]  }
  0x69   :  { %1388 = vmatprep.subr.bf16.mxu1 %v1818_v1  ;;  %v1620_v39 = vld [vmem:[#allocation8 + $0x30] sm:$0xff]   ;;  %v1623_v42 = vld [vmem:[#allocation8 + $0x38] sm:$0xff]   ;;  %p1761_p1 = por %p1760_p0, %p1759_p13 }
  0x6a   :  { %211 = vmatpush1.bf16.msra.mxu0 %v1587_v9  ;;  %v112_v46 = vld [vmem:[%s2094_s5] sm:$0x3]  ;;  %v1258_v6 = vld [vmem:[%s2094_s5 + $0x2] ss:$0 sm:$0xff]  ;;  %v1641_v44 = vld [vmem:[#allocation8 + $0xf8] sm:$0xff]  }
  0x6b   :  { %212 = vmatprep.subr.bf16.mxu0 %v1588_v10  ;;  %v117_v48 = vrot.slane %v112_v46, %v116_v45  ;;  %v121_v49 = vrot.slane %v112_v46, %v120_v47  ;;  %p1762_p2 = pnand %p1761_p1, %p1755_p12 }
  0x6c   :  { %1389 = vmatpush3.bf16.msra.mxu1 %v1610_v18 }
  0x6d   :  { %1390 = vmatprep.subr.bf16.mxu1 %v1818_v1 }
  0x6e   :  { %213 = vmatpush1.bf16.msra.mxu0 %v1590_v12  ;;  %v530_v12 = vld [vmem:[%s2091_s2] sm:$0xf]  ;;  %s1821_s2 = smov 96  }
  0x6f   :  { %214 = vmatprep.subr.bf16.mxu0 %v1591_v14 }
  0x70   :  { %1391 = vmatpush3.bf16.msra.mxu1 %v1613_v21  ;;  %v1626_v21 = vld [vmem:[#allocation8 + $0x100] sm:$0xff]  }
  0x71   :  { %1392 = vmatprep.subr.bf16.mxu1 %v1818_v1 }
  0x72   :  { %215 = vmatpush1.bf16.msra.mxu0 %v1593_v16 }
  0x73   :  { %216 = vmatprep.subr.bf16.mxu0 %v1594_v17 }
  0x74   :  { %1393 = vmatpush3.bf16.msra.mxu1 %v1616_v26 }
  0x75   :  { %1394 = vmatprep.subr.bf16.mxu1 %v1818_v1 }
  0x76   :  { %217 = vmatpush1.bf16.msra.mxu0 %v1596_v19  ;;  %v1624_v19 = vld [vmem:[#allocation8 + $0x140] sm:$0xff]  }
  0x77   :  { %218 = vmatprep.subr.bf16.mxu0 %v1597_v20  ;;  %v1625_v20 = vld [vmem:[#allocation8 + $0x148] sm:$0xff]  }
  0x78   :  { %1395 = vmatpush3.bf16.msra.mxu1 %v1619_v38  ;;  %v1636_v38 = vld [vmem:[#allocation8 + $0x128] sm:$0xff]  }
  0x79   :  { %1396 = vmatprep.subr.bf16.mxu1 %v1818_v1 }
  0x7a   :  { %219 = vmatpush1.bf16.msra.mxu0 %v1599_v22  ;;  %v1981_v22 = vld [vmem:[#allocation5] sm:$0xff] }
  0x7b   :  { %1292 = vmatprep.subr.bf16.mxu0 %v1600_v23 }
  0x7c   :  { %1397 = vmatpush3.bf16.msra.mxu1 %v1622_v41  ;;  %v1639_v41 = vld [vmem:[#allocation8 + $0xf0] sm:$0xff]  }
  0x7d   :  { %237 = vmatmul.mubr.bf16.vlgmr.msra.gmra.mrb[0].mxu0 %v95_v24  ;;  %1402 = vmatprep.subr.bf16.mxu1 %v1818_v1 }
  0x7e   :  { %1293 = vmatpush3.bf16.msra.mxu0 %v1602_v25 }
  0x7f   :  { %1294 = vmatprep.subr.bf16.mxu0 %v1603_v27  ;;  %1399 = vmatmul.mubr.bf16.vlgmr.msra.gmra.mrb[0].mxu1 %v95_v24 }
  0x80   :  { %1404 = vmatprep.mubr.msk.bf16.mxu1 %vm1819_vm0, %v1818_v1 }
  0x82   :  { %1295 = vmatpush3.bf16.msra.mxu0 %v1605_v28  ;;  %v1627_v28 = vld [vmem:[#allocation8 + $0xc0] sm:$0xff]  }
  0x83   :  { %1296 = vmatprep.subr.bf16.mxu0 %v1606_v29  ;;  %v1628_v29 = vld [vmem:[#allocation8 + $0x108] sm:$0xff]  }
  0x86   :  { %1297 = vmatpush3.bf16.msra.mxu0 %v1608_v30 }
  0x87   :  { %1298 = vmatprep.subr.bf16.mxu0 %v1609_v31  ;;  %v1629_v31 = vld [vmem:[#allocation8 + $0xc8] sm:$0xff]  }
  0x8a   :  { %1299 = vmatpush3.bf16.msra.mxu0 %v1611_v32  ;;  %v1630_v32 = vld [vmem:[#allocation8 + $0x110] sm:$0xff]  }
  0x8b   :  { %1300 = vmatprep.subr.bf16.mxu0 %v1612_v33  ;;  %v1631_v33 = vld [vmem:[#allocation8 + $0xd0] sm:$0xff]  }
  0x8e   :  { %1301 = vmatpush3.bf16.msra.mxu0 %v1614_v34  ;;  %v1632_v34 = vld [vmem:[#allocation8 + $0x118] sm:$0xff]  }
  0x8f   :  { %1302 = vmatprep.subr.bf16.mxu0 %v1615_v35  ;;  %v1633_v35 = vld [vmem:[#allocation8 + $0xd8] sm:$0xff]  }
  0x92   :  { %1303 = vmatpush3.bf16.msra.mxu0 %v1617_v36  ;;  %v1634_v36 = vld [vmem:[#allocation8 + $0x120] sm:$0xff]  }
  0x93   :  { %1304 = vmatprep.subr.bf16.mxu0 %v1618_v37  ;;  %v1635_v37 = vld [vmem:[#allocation8 + $0xe0] sm:$0xff]  }
  0x96   :  { %1305 = vmatpush3.bf16.msra.mxu0 %v1620_v39  ;;  %v1637_v39 = vld [vmem:[#allocation8 + $0xe8] sm:$0xff]  }
  0x97   :  { %1306 = vmatprep.subr.bf16.mxu0 %v1621_v40  ;;  %v1638_v40 = vld [vmem:[#allocation8 + $0x130] sm:$0xff]  }
  0x9a   :  { %1307 = vmatpush3.bf16.msra.mxu0 %v1623_v42  ;;  %v1640_v42 = vld [vmem:[#allocation8 + $0x138] sm:$0xff]  }
 0x150   :  { %v238_v50 = vpop.f32.mrb[0].mxu0 }
 0x151   :  { %v239_v51 = vadd.f32 %v238_v50, %v117_v48  ;;  %v240_v52 = vpop.f32.mrb[1].mxu0 }
 0x152   :  { %v241_v53 = vadd.f32 %v240_v52, %v121_v49  ;;  %v242_v54 = vpop.f32.mrb[2].mxu0  ;;  %v379_v60 = vpop.f32.mrb[0].mxu1  ;;  %v851_v52 = vld [vmem:[#allocation10 + $0x8] sm:$0xff] }
 0x153   :  { %v245_v55 = vmax.f32 %v239_v51, 0.0  ;;  %v243_v56 = vpop.f32.mrb[3].mxu0  ;;  %v1400_v61 = vpop.f32.mrb[1].mxu1  ;;  %v850_v51 = vld [vmem:[#allocation10] sm:$0xff] }
 0x154   :  { %v246_v57 = vmax.f32 %v241_v53, 0.0  ;;  %v382_v62 = vpop.f32.mrb[2].mxu1  ;;  %v852_v53 = vld [vmem:[#allocation10 + $0x10] sm:$0xff]  ;;  %v1822_v56 = vmov 0.0|0.0  }
 0x155   :  { %v1965_v59 = vpack.c.bf16 %v245_v55, %v245_v55  ;;  %v1401_v63 = vpop.f32.mrb[3].mxu1  ;;  %1501 = vmatprep.subr.bf16.mxu0 %v1822_v56 }
 0x156   :  { %v248_v58 = vpack.c.bf16 %v246_v57, %v246_v57  ;;  %v1502_v57 = vpack.c.bf16 %v851_v52, %v850_v51  ;;  %v854_v63 = vld [vmem:[#allocation10 + $0x20] sm:$0xff]  ;;  %v1004_v52 = vld [vmem:[#allocation10 + $0xc8] sm:$0xff] }
 0x157   :  { %v1003_v51 = vld [vmem:[#allocation10 + $0xc0] sm:$0xff] }
 0x158   :  { %513 = vmatprep.mubr.bf16.mxu0 %v248_v58 }
 0x159   :  { %514 = vmatmul.mubr.bf16.vlgmr.msra.gmra.mrb[4].mxu0 %v1965_v59 }
 0x15a   :  { %1428 = vmatprep.mubr.msk.f32.mxu0 %vm1819_vm0, %v1818_v1  ;;  %1503 = vmatpush3.bf16.msra.mxu0 %v1502_v57 }
 0x15b   :  { %1504 = vmatprep.subr.bf16.mxu0 %v1822_v56 }
 0x22c   :  { %v1308_v2 = vpop.f32.mrb[4].mxu0 }
 0x22d   :  { %v1309_v3 = vpop.f32.mrb[5].mxu0 }
 0x22e   :  { %v1310_v4 = vadd.f32 %v1309_v3, %v1308_v2  ;;  %v1311_v5 = vpop.f32.mrb[6].mxu0  ;;  %v855_v2 = vld [vmem:[#allocation10 + $0x28] sm:$0xff] }
 0x22f   :  { %v1312_v7 = vpop.f32.mrb[7].mxu0  ;;  %v1508_v5 = vpack.c.bf16 %v855_v2, %v854_v63 }
 0x230   :  { %v516_v8 = vadd.f32 %v1310_v4, %v379_v60 }
 0x232   :  { %v528_v9 = vadd.f32 %v1258_v6, %v516_v8 }
 0x234   :  { %v529_v10 = vpack.c.bf16 %v528_v9, %v528_v9 }
 0x236   :  { %v537_v11 = vsel %vm535_vm1, %v529_v10, 0 }
 0x237   :  { %1403 = vmatpush3.bf16.msra.mxu1 %v537_v11 }
 0x238   :  { %1408 = vmatprep.subr.bf16.mxu1 %v1818_v1 }
 0x23a   :  { %1405 = vmatmul.mubr.msk.bf16.vlgmr.msra.gmra.mrb[4].mxu1 %vm531_vm2, %v530_v12 }
 0x23b   :  { %1412 = vmatprep.mubr.msk.bf16.mxu1 %vm1819_vm0, %v1818_v1  ;;  %1409 = vmatpush3.bf16.msra.mxu1 %v1624_v19 }
 0x23c   :  { %1410 = vmatprep.subr.bf16.mxu1 %v1818_v1 }
 0x23f   :  { %1411 = vmatpush3.bf16.msra.mxu1 %v1625_v20 }
 0x240   :  { %1319 = vmatprep.subr.bf16.mxu1 %v1626_v21 }
 0x30d   :  { %v573_v13 = vpop.f32.mrb[4].mxu1 }
 0x30e   :  { %581 = vrot.lane.b32.xlu0 %v573_v13, %s1810_s1  ;;  %v1406_v14 = vpop.f32.mrb[5].mxu1 }
 0x30f   :  { %v576_v15 = vpop.f32.mrb[6].mxu1  ;;  %v2008_v14 = vand.u32 127, %v114_v43 }
 0x310   :  { %v1407_v16 = vpop.f32.mrb[7].mxu1 }
 0x311   :  { %vm952_vm7 = vcmp.ge.s32.totalorder %v2008_v14, 4  ;;  %vm953_vm8 = vcmp.lt.s32.totalorder %v2008_v14, 8  ;;  %vm932_vm10 = vcmp.lt.s32.totalorder %v2008_v14, 4  ;;  %vm975_vm15 = vcmp.ge.s32.totalorder %v2008_v14, 48 }
 0x312   :  { %vm954_vm9 = vmand %vm952_vm7, %vm953_vm8  ;;  %vm1169_vm2 = vcmp.ge.s32.totalorder %v2008_v14, 12  ;;  %vm986_vm7 = vcmp.lt.s32.totalorder %v2008_v14, 96 }
 0x380   :  { %v582_v17 = vpop.permute.xlu0 %581 }
 0x381   :  { %v584_v18 = vadd.f32 %v582_v17, %v528_v9 }
 0x383   :  { %586 = vrot.lane.b32.xlu0 %v584_v18, %s1820_s25 }
 0x3f5   :  { %v587_v23 = vpop.permute.xlu0 %586 }
 0x3f6   :  { %v589_v24 = vmul.f32 %v587_v23, %v1981_v22 }
 0x3f8   :  { %591 = vrot.lane.b32.xlu1 %v589_v24, %s1810_s1 }
 0x46a   :  { %v592_v25 = vpop.permute.xlu1 %591 }
 0x46b   :  { %v594_v26 = vadd.f32 %v592_v25, %v528_v9 }
 0x46d   :  { %v627_v27 = vpack.c.bf16 %v594_v26, %v594_v26  ;;  %v995_v26 = vld [vmem:[#allocation10 + $0x80] sm:$0xff] }
 0x46f   :  { %633 = vrot.lane.b32.xlu1 %v627_v27, %s1821_s2  ;;  %v996_v27 = vld [vmem:[#allocation10 + $0x88] sm:$0xff] }
 0x4e1   :  { %v634_v30 = vpop.permute.xlu1 %633 }
 0x4e2   :  { %1413 = vmatmul.mubr.msk.bf16.vlgmr.msra.gmra.mrb[8].mxu1 %vm647_vm3, %v634_v30  ;;  %v1014_v30 = vld [vmem:[#allocation10 + $0x108] sm:$0xff]  ;;  %vm1171_vm3 = vcmp.ge.s32.totalorder %v2008_v14, 24 }
 0x4e3   :  { %1320 = vmatpush3.bf16.msra.mxu1 %v1627_v28  ;;  %819 = vmatprep.mubr.bf16.mxu1 %v248_v58  ;;  %v853_v58 = vld [vmem:[#allocation10 + $0x18] sm:$0xff]  ;;  %v1013_v28 = vld [vmem:[#allocation10 + $0x100] sm:$0xff] }
 0x4e4   :  { %1321 = vmatprep.subr.bf16.mxu1 %v1628_v29  ;;  %v1505_v62 = vpack.c.bf16 %v853_v58, %v852_v53  ;;  %v1535_v29 = vpack.c.bf16 %v996_v27, %v995_v26  ;;  %v1021_v53 = vld [vmem:[#allocation10 + $0x140] sm:$0xff]  ;;  %v1005_v58 = vld [vmem:[#allocation10 + $0xd0] sm:$0xff]  ;;  %v1170_v27 = vsel %vm1169_vm2, 1, %v1817_v0 }
 0x4e6   :  { %1506 = vmatpush3.bf16.msra.mxu0 %v1505_v62 }
 0x4e7   :  { %1322 = vmatpush3.bf16.msra.mxu1 %v1629_v31  ;;  %1507 = vmatprep.subr.bf16.mxu0 %v1822_v56  ;;  %v997_v31 = vld [vmem:[#allocation10 + $0x90] sm:$0xff] }
 0x4e8   :  { %1323 = vmatprep.subr.bf16.mxu1 %v1630_v32  ;;  %v998_v32 = vld [vmem:[#allocation10 + $0x98] sm:$0xff] }
 0x4ea   :  { %1509 = vmatpush3.bf16.msra.mxu0 %v1508_v5 }
 0x4eb   :  { %1324 = vmatpush3.bf16.msra.mxu1 %v1631_v33  ;;  %1510 = vmatprep.subr.bf16.mxu0 %v1822_v56  ;;  %v1511_v33 = vpack.c.bf16 %v1014_v30, %v1013_v28  ;;  %v1172_v28 = vsel %vm1171_vm3, 1, %v1817_v0 }
 0x4ec   :  { %1325 = vmatprep.subr.bf16.mxu1 %v1632_v34  ;;  %v1015_v34 = vld [vmem:[#allocation10 + $0x110] sm:$0xff] }
 0x4ef   :  { %1326 = vmatpush3.bf16.msra.mxu1 %v1633_v35  ;;  %v1016_v35 = vld [vmem:[#allocation10 + $0x118] sm:$0xff] }
 0x4f0   :  { %1327 = vmatprep.subr.bf16.mxu1 %v1634_v36  ;;  %v1538_v36 = vpack.c.bf16 %v998_v32, %v997_v31 }
 0x4f3   :  { %1328 = vmatpush3.bf16.msra.mxu1 %v1635_v37  ;;  %v1514_v37 = vpack.c.bf16 %v1016_v35, %v1015_v34 }
 0x4f4   :  { %1329 = vmatprep.subr.bf16.mxu1 %v1636_v38  ;;  %v999_v38 = vld [vmem:[#allocation10 + $0xa0] sm:$0xff] }
 0x4f7   :  { %1330 = vmatpush3.bf16.msra.mxu1 %v1637_v39  ;;  %v1000_v39 = vld [vmem:[#allocation10 + $0xa8] sm:$0xff] }
 0x4f8   :  { %1331 = vmatprep.subr.bf16.mxu1 %v1638_v40  ;;  %v1017_v40 = vld [vmem:[#allocation10 + $0x120] sm:$0xff] }
 0x4fb   :  { %1332 = vmatpush3.bf16.msra.mxu1 %v1639_v41  ;;  %v1018_v41 = vld [vmem:[#allocation10 + $0x128] sm:$0xff] }
 0x4fc   :  { %1333 = vmatprep.subr.bf16.mxu1 %v1640_v42  ;;  %v1541_v42 = vpack.c.bf16 %v1000_v39, %v999_v38 }
 0x4ff   :  { %1334 = vmatpush3.bf16.msra.mxu1 %v1641_v44  ;;  %v1517_v44 = vpack.c.bf16 %v1018_v41, %v1017_v40 }
 0x500   :  { %1534 = vmatprep.subr.bf16.mxu1 %v1822_v56 }
 0x502   :  { %820 = vmatmul.mubr.bf16.vlgmr.msra.gmra.mrb[12].mxu1 %v1965_v59  ;;  %v1279_v59 = vld [vmem:[%s2094_s5 + $0x3] ss:$0 sm:$0xff]  ;;  %s1823_s5 = smov 80  }
 0x503   :  { %1498 = vmatprep.mubr.msk.f32.mxu1 %vm1819_vm0, %v1818_v1  ;;  %1536 = vmatpush3.bf16.msra.mxu1 %v1535_v29 }
 0x504   :  { %1537 = vmatprep.subr.bf16.mxu1 %v1822_v56 }
 0x507   :  { %1539 = vmatpush3.bf16.msra.mxu1 %v1538_v36 }
 0x508   :  { %1540 = vmatprep.subr.bf16.mxu1 %v1822_v56 }
 0x50b   :  { %1542 = vmatpush3.bf16.msra.mxu1 %v1541_v42 }
 0x50c   :  { %1543 = vmatprep.subr.bf16.mxu1 %v1822_v56 }
 0x5b5   :  { %v685_v45 = vpop.f32.mrb[8].mxu1 }
 0x5b6   :  { %v1414_v46 = vpop.f32.mrb[9].mxu1 }
 0x5b7   :  { %v688_v47 = vpop.f32.mrb[10].mxu1  ;;  %v1002_v46 = vld [vmem:[#allocation10 + $0xb8] sm:$0xff] }
 0x5b8   :  { %v1415_v48 = vpop.f32.mrb[11].mxu1  ;;  %v1019_v47 = vld [vmem:[#allocation10 + $0x130] sm:$0xff] }
 0x5b9   :  { %v1020_v48 = vld [vmem:[#allocation10 + $0x138] sm:$0xff] }
 0x5d5   :  { %v1335_v49 = vpop.f32.mrb[12].mxu1 }
 0x5d6   :  { %v1336_v50 = vpop.f32.mrb[13].mxu1 }
 0x5d7   :  { %v1337_v54 = vadd.f32 %v1336_v50, %v1335_v49  ;;  %v1338_v55 = vpop.f32.mrb[14].mxu1  ;;  %v1520_v50 = vpack.c.bf16 %v1020_v48, %v1019_v47 }
 0x5d8   :  { %v1339_v60 = vpop.f32.mrb[15].mxu1  ;;  %v1547_v55 = vpack.c.bf16 %v1004_v52, %v1003_v51 }
 0x5d9   :  { %v822_v61 = vadd.f32 %v1337_v54, %v685_v45  ;;  %v1001_v45 = vld [vmem:[#allocation10 + $0xb0] sm:$0xff]  ;;  %v1022_v54 = vld [vmem:[#allocation10 + $0x148] sm:$0xff] }
 0x5da   :  { %v1544_v49 = vpack.c.bf16 %v1002_v46, %v1001_v45  ;;  %v1523_v57 = vpack.c.bf16 %v1022_v54, %v1021_v53 }
 0x5db   :  { %v1994_v3 = vadd.f32 %v1279_v59, %v822_v61  ;;  %v1006_v59 = vld [vmem:[#allocation10 + $0xd8] sm:$0xff] }
 0x5dc   :  { %1545 = vmatpush3.bf16.msra.mxu1 %v1544_v49  ;;  %v1550_v60 = vpack.c.bf16 %v1006_v59, %v1005_v58 }
 0x5dd   :  { %835 = vst [vmem:[#allocation11] sm:$0xff] %v1994_v3  ;;  %v836_v4 = vsub.f32 %v1994_v3, %v1981_v22  ;;  %1546 = vmatprep.subr.bf16.mxu1 %v1822_v56 }
 0x5df   :  { %v837_v6 = vmul.f32 %v836_v4, %v836_v4 }
 0x5e0   :  { %1548 = vmatpush3.bf16.msra.mxu1 %v1547_v55 }
 0x5e1   :  { %839 = vrot.lane.b32.xlu0 %v837_v6, %s1823_s5  ;;  %1549 = vmatprep.subr.bf16.mxu1 %v1822_v56 }
 0x5e4   :  { %1551 = vmatpush3.bf16.msra.mxu1 %v1550_v60 }
 0x5e5   :  { %1552 = vmatprep.subr.bf16.mxu1 %v1822_v56 }
 0x653   :  { %v840_v7 = vpop.permute.xlu0 %839 }
 0x654   :  { %v842_v8 = vadd.f32 %v840_v7, %v837_v6 }
 0x656   :  { %1642 = vrsqrt.f32 %v842_v8  ;;  %vm845_vm4 = vcmp.eq.f32.partialorder %v842_v8, inf  ;;  %v848_v11 = vand.u32 2147483648, %v842_v8  ;;  %vm847_vm6 = vcmp.eq.f32.partialorder %v842_v8, 0.0 }
 0x660   :  { %v1643_v9 = vpop.eup %1642 }
 0x661   :  { %v844_v10 = vmul.f32 %v1643_v9, %v842_v8  ;;  %v1024_v9 = vld [vmem:[#allocation10 + $0x158] sm:$0xff] }
 0x663   :  { %v846_v12 = vsel %vm845_vm4, %v842_v8, %v844_v10  ;;  %v1023_v8 = vld [vmem:[#allocation10 + $0x150] sm:$0xff] }
 0x664   :  { %v2001_v13 = vsel %vm847_vm6, %v848_v11, %v846_v12  ;;  %v1526_v10 = vpack.c.bf16 %v1024_v9, %v1023_v8  ;;  %v1007_v11 = vld [vmem:[#allocation10 + $0xe0] sm:$0xff]  ;;  %v1008_v12 = vld [vmem:[#allocation10 + $0xe8] sm:$0xff]  ;;  %vm1174_vm6 = vcmp.ge.s32.totalorder %v2008_v14, 36 }
 0x665   :  { %1429 = vmatmul.mubr.msk.f32.vlgmr.msra.gmra.mrb[8].mxu0 %vm856_vm5, %v2001_v13  ;;  %v1175_v34 = vsel %vm1174_vm6, 1, %v1817_v0 }
 0x666   :  { %1463 = vmatprep.mubr.msk.f32.mxu0 %vm1819_vm0, %v1818_v1  ;;  %1512 = vmatpush3.bf16.msra.mxu0 %v1511_v33  ;;  %v1173_v33 = vadd.s32 %v1172_v28, %v1170_v27 }
 0x667   :  { %1513 = vmatprep.subr.bf16.mxu0 %v1822_v56 }
 0x668   :  { %v1176_v42 = vadd.s32 %v1175_v34, %v1173_v33 }
 0x66a   :  { %1515 = vmatpush3.bf16.msra.mxu0 %v1514_v37 }
 0x66b   :  { %1516 = vmatprep.subr.bf16.mxu0 %v1822_v56 }
 0x66e   :  { %1518 = vmatpush3.bf16.msra.mxu0 %v1517_v44 }
 0x66f   :  { %1519 = vmatprep.subr.bf16.mxu0 %v1822_v56 }
 0x672   :  { %1521 = vmatpush3.bf16.msra.mxu0 %v1520_v50 }
 0x673   :  { %1522 = vmatprep.subr.bf16.mxu0 %v1822_v56 }
 0x676   :  { %1524 = vmatpush3.bf16.msra.mxu0 %v1523_v57 }
 0x677   :  { %1525 = vmatprep.subr.bf16.mxu0 %v1822_v56 }
 0x67a   :  { %1527 = vmatpush3.bf16.msra.mxu0 %v1526_v10 }
 0x67b   :  { %1528 = vmatprep.subr.bf16.mxu0 %v1822_v56 }
 0x738   :  { %v926_v15 = vpop.f32.mrb[8].mxu0 }
 0x739   :  { %v1430_v16 = vpop.f32.mrb[9].mxu0  ;;  %v955_v17 = vsel %vm954_vm9, %v926_v15, 3e+38  ;;  %v933_v18 = vsel %vm932_vm10, %v926_v15, 3e+38  ;;  %v1553_v15 = vpack.c.bf16 %v1008_v12, %v1007_v11 }
 0x73a   :  { %956 = vmin.xlane.f32.xlu1 %v955_v17  ;;  %934 = vmin.xlane.f32.xlu0 %v933_v18  ;;  %v1025_v16 = vld [vmem:[#allocation10 + $0x160] sm:$0xff] }
 0x73b   :  { %1554 = vmatpush3.bf16.msra.mxu1 %v1553_v15 }
 0x73c   :  { %1555 = vmatprep.subr.bf16.mxu1 %v1822_v56 }
 0x7c7   :  { %v957_v19 = vpop.xlane.xlu1 %956  ;;  %v935_v20 = vpop.xlane.xlu0 %934 }
 0x7c8   :  { %vm958_vm11 = vcmp.le.f32.partialorder %v955_v17, %v957_v19  ;;  %vm936_vm12 = vcmp.le.f32.partialorder %v933_v18, %v935_v20  ;;  %v1026_v17 = vld [vmem:[#allocation10 + $0x168] sm:$0xff]  ;;  %v1009_v19 = vld [vmem:[#allocation10 + $0xf0] sm:$0xff]  ;;  %v1010_v20 = vld [vmem:[#allocation10 + $0xf8] sm:$0xff] }
 0x7c9   :  { %v2014_v43 = vsel %vm958_vm11, %v2008_v14, 127  ;;  %v2017_v21 = vsel %vm936_vm12, %v2008_v14, 127  ;;  %v1529_v18 = vpack.c.bf16 %v1026_v17, %v1025_v16 }
 0x7ca   :  { %v961_v22 = vshra.s32 %v2014_v43, 16  ;;  %v939_v23 = vshra.s32 %v2017_v21, 16  ;;  %v960_v61 = vand.u32 65535, %v2014_v43  ;;  %v938_v62 = vand.u32 65535, %v2017_v21  ;;  %v1027_v21 = vld [vmem:[#allocation10 + $0x170] sm:$0xff] }
 0x7cb   :  { %1530 = vmatpush3.bf16.msra.mxu0 %v1529_v18  ;;  %v1556_v43 = vpack.c.bf16 %v1010_v20, %v1009_v19 }
 0x7cc   :  { %v2021_v24 = vcvt.s32.f32 %v961_v22  ;;  %v2023_v25 = vcvt.s32.f32 %v939_v23  ;;  %v940_v4 = vcvt.s32.f32 %v938_v62  ;;  %v962_v5 = vcvt.s32.f32 %v960_v61  ;;  %1531 = vmatprep.subr.bf16.mxu0 %v1822_v56  ;;  %v1028_v22 = vld [vmem:[#allocation10 + $0x178] sm:$0xff] }
 0x7cd   :  { %1557 = vmatpush3.bf16.msra.mxu1 %v1556_v43  ;;  %v1532_v23 = vpack.c.bf16 %v1028_v22, %v1027_v21 }
 0x7ce   :  { %964 = vmin.xlane.f32.xlu0 %v2021_v24  ;;  %942 = vmin.xlane.f32.xlu1 %v2023_v25 }
 0x7cf   :  { %1533 = vmatpush3.bf16.msra.mxu0 %v1532_v23 }
 0x85b   :  { %v943_v63 = vpop.xlane.xlu1 %942  ;;  %v965_v2 = vpop.xlane.xlu0 %964 }
 0x85c   :  { %vm944_vm13 = vcmp.eq.f32.partialorder %v2023_v25, %v943_v63  ;;  %vm966_vm14 = vcmp.eq.f32.partialorder %v2021_v24, %v965_v2  ;;  %v1282_v24 = vadd.s32 4294967248, %v2008_v14  ;;  %v949_v29 = vcvt.f32.s32 %v943_v63 }
 0x85d   :  { %v945_v6 = vsel %vm944_vm13, %v940_v4, inf  ;;  %v967_v7 = vsel %vm966_vm14, %v962_v5, inf  ;;  %v971_v31 = vcvt.f32.s32 %v965_v2 }
 0x85e   :  { %946 = vmin.xlane.f32.xlu1 %v945_v6  ;;  %968 = vmin.xlane.f32.xlu0 %v967_v7  ;;  %v977_v25 = vsel %vm975_vm15, %v1282_v24, %v2008_v14  ;;  %v950_v35 = vshll.u32 %v949_v29, 16 }
 0x85f   :  { %vm978_vm0 = vcmp.ge.s32.totalorder %v977_v25, 12  ;;  %vm980_vm1 = vcmp.ge.s32.totalorder %v977_v25, 24  ;;  %vm983_vm4 = vcmp.ge.s32.totalorder %v977_v25, 36  ;;  %v972_v39 = vshll.u32 %v971_v31, 16 }
 0x860   :  { %v979_v26 = vsel %vm978_vm0, 1, %v1817_v0  ;;  %v981_v56 = vsel %vm980_vm1, 1, %v1817_v0  ;;  %v984_v32 = vsel %vm983_vm4, 1, %v1817_v0 }
 0x861   :  { %v982_v30 = vadd.s32 %v981_v56, %v979_v26 }
 0x863   :  { %v985_v36 = vadd.s32 %v984_v32, %v982_v30 }
 0x8eb   :  { %v947_v37 = vpop.xlane.xlu1 %946  ;;  %v969_v38 = vpop.xlane.xlu0 %968 }
 0x8ec   :  { %v948_v40 = vcvt.f32.s32 %v947_v37  ;;  %v970_v41 = vcvt.f32.s32 %v969_v38 }
 0x8ee   :  { %v951_v44 = vadd.s32 %v950_v35, %v948_v40  ;;  %v973_v45 = vadd.s32 %v972_v39, %v970_v41 }
 0x8f0   :  { %vm987_vm8 = vcmp.eq.s32.totalorder %v985_v36, %v951_v44  ;;  %v1281_v46 = vadd.s32 4294967292, %v973_v45  ;;  %vm1177_vm9 = vcmp.eq.s32.totalorder %v1176_v42, %v951_v44 }
 0x8f1   :  { %vm988_vm10 = vmand %vm986_vm7, %vm987_vm8  ;;  %v1178_v47 = vsel %vm1177_vm9, %v2001_v13, 0.0 }
 0x8f2   :  { %v989_v0 = vsel %vm988_vm10, 1.0, %v1818_v1  ;;  %vm990_vm11 = vcmp.eq.s32.totalorder %v985_v36, %v1281_v46  ;;  %v1179_v48 = vsel %vm856_vm5, %v1178_v47, 0.0 }
 0x8f3   :  { %v993_v49 = vmul.f32 %v989_v0, %v1994_v3  ;;  %vm991_vm12 = vmand %vm986_vm7, %vm990_vm11  ;;  %1180 = vadd.xlane.f32.xlu0 %v1179_v48 }
 0x8f4   :  { %v992_v50 = vsel %vm991_vm12, 1.0, %v1818_v1 }
 0x8f5   :  { %1499 = vmatmul.mubr.f32.vlgmr.msra.gmra.mrb[16].mxu1 %v993_v49  ;;  %v1011_v51 = vmul.f32 %v992_v50, %v1994_v3 }
 0x8f7   :  { %1464 = vmatmul.mubr.f32.vlgmr.msra.gmra.mrb[10].mxu0 %v1011_v51 }
 0x8f8   :  { %1765 = shalt.err (!%p1762_p2)
}
 0x8f9   :  { %s1766_s10 = scalar_lea.hbm %s2096_s7, 128 }
 0x8fa   :  { %p1767_p3 = scmp.ne.s32.totalorder %s2096_s7, %s1766_s10  ;;  %p1770_p4 = scmp.lt.u32.totalorder %s1766_s10, %s2096_s7 }
 0x8fc   :  { %p1772_p5 = pnand %p1770_p4, %p1767_p3 }
 0x8fe   :  { %1775 = shalt.err (!%p1772_p5)
}
 0x8ff   :  { %1196 = dma.vmem_to_hbm [thread:$0]  %s1194_s28, 128, %s2096_s7, [#allocation4]   ;;  %vm1183_vm5 = vcmp.eq.s32.totalorder %v2008_v14, 48 }
 0x900   :  { %s1825_s18 = smov [#allocation12]  }
 0x901   :  { %s1203_s19 = sshll.u32 %s1825_s18, 4  ;;  %s1204_s19 = int_to_ptr.vmem [resolvable:$true] %s1203_s19 }
 0x902   :  { %s1776_s4 = scalar_lea.vmem %s1204_s19, 128  ;;  %p1781_p7 = scmp.lt.s32.totalorder %s1204_s19, %s1204_s19 }
 0x903   :  { %p1777_p6 = scmp.ne.s32.totalorder %s1204_s19, %s1776_s4  ;;  %p1782_p8 = scmp.lt.s32.totalorder %s1776_s4, %s1776_s4 }
 0x905   :  { %p1783_p9 = por %p1782_p8, %p1781_p7 }
 0x907   :  { %p1784_p10 = pnand %p1783_p9, %p1777_p6 }
 0x980   :  { %v1181_v1 = vpop.xlane.xlu0 %1180 }
 0x981   :  { %v1182_v3 = vmul.f32 0.083333336, %v1181_v1 }
 0x983   :  { %v1184_v57 = vsel %vm1183_vm5, %v1182_v3, 0.0 }
 0x9c8   :  { %v1165_v13 = vpop.f32.mrb[16].mxu1 }
 0x9c9   :  { %v1500_v52 = vpop.f32.mrb[17].mxu1 }
 0x9ca   :  { %v1095_v53 = vpop.f32.mrb[10].mxu0 }
 0x9cb   :  { %v1166_v54 = vadd.f32 %v1165_v13, %v1095_v53  ;;  %v1465_v55 = vpop.f32.mrb[11].mxu0 }
 0x9cd   :  { %v1185_v58 = vadd.f32 %v1184_v57, %v1166_v54 }
 0x9cf   :  { %1186 = vst [vmem:[#allocation12] sm:$0xff] %v1185_v58 }
 0x9d0   :  { %1787 = shalt.err (!%p1784_p10)
}
 0x9d1   :  { %s1788_s3 = scalar_lea.hbm %s2097_s8, 128 }
 0x9d2   :  { %p1789_p11 = scmp.ne.s32.totalorder %s2097_s8, %s1788_s3  ;;  %p1792_p12 = scmp.lt.u32.totalorder %s1788_s3, %s2097_s8 }
 0x9d4   :  { %p1794_p13 = pnand %p1792_p12, %p1789_p11 }
 0x9d6   :  { %1797 = shalt.err (!%p1794_p13)
}
 0x9d7   :  { %1206 = dma.vmem_to_hbm [thread:$0]  %s1204_s19, 128, %s2097_s8, [#allocation13]  }
 0x9d8   :  { %1804 = dma.done.wait [#allocation4], 128  }
 0x9d9   :  { %1805 = vsyncadd [#allocation4], 4294967168 }
 0x9da   :  { %1806 = dma.done.wait [#allocation13], 128  }
 0x9db   :  { %1807 = vsyncadd [#allocation13], 4294967168 }
 0x9dc   :  { %1213 = vsyncpa [#allocation3], 1 }
 0x9dd   :  { %1214 = vsyncpa [#allocation6], 1 }
 0x9de   :  { %1215 = vsyncpa [#allocation9], 1 }
 0x9df   :  { %1216 = vsyncpa [#allocation4], 1 }
 0x9e0   :  { %1217 = vsyncpa [#allocation13], 1 }

</bundles_post_ra>
